<compile_context>
chip_gen: v7x
topology: tpu7x:2x2x1
jax: 0.10.0
libtpu: 0.0.40
codegen_flags: <defaults>
</compile_context>

<pallas_src>
import functools

import jax
import jax.numpy as jnp
import numpy as np
from jax import lax
from jax.experimental import pallas as pl
from jax.experimental.pallas import tpu as pltpu

BN_EPS = 1e-3


# ---------------------------------------------------------------------------
# In-kernel helpers: 3-tap channel-mixing convs on a flattened (C, H*W) image
# ---------------------------------------------------------------------------
def _conv_h_flat(x, w_fold, b, pad):
    """(3,1) conv, dilation d along H; pad == d*W (flat shift per tap)."""
    C, L = x.shape
    z = jnp.zeros((C, pad), jnp.float32)
    xp = jnp.concatenate([z, x, z], axis=1)                        # (C, L+2*pad)
    patch = jnp.concatenate(
        [xp[:, k * pad:k * pad + L] for k in range(3)], axis=0)    # (3C, L)
    return jnp.dot(w_fold, patch, preferred_element_type=jnp.float32) + b


def _conv_w_flat(x, w_fold, b, d, mask_l, mask_r):
    """(1,3) conv, dilation d along W; masks kill the row wrap-around of the
    flat shift, which is exactly the conv's zero padding along W."""
    C, L = x.shape
    z = jnp.zeros((C, d), jnp.float32)
    xp = jnp.concatenate([z, x, z], axis=1)                        # (C, L+2d)
    t0 = xp[:, 0:L] * mask_l                 # reads column w - d
    t1 = x                                   # reads column w
    t2 = xp[:, 2 * d:2 * d + L] * mask_r     # reads column w + d
    patch = jnp.concatenate([t0, t1, t2], axis=0)                  # (3C, L)
    return jnp.dot(w_fold, patch, preferred_element_type=jnp.float32) + b


def _partial_stats(y):
    """Per-image per-channel (sum, sum of squares) -> (C, 2)."""
    return jnp.concatenate(
        [jnp.sum(y, axis=1, keepdims=True),
         jnp.sum(y * y, axis=1, keepdims=True)], axis=1)


# ---------------------------------------------------------------------------
# Kernels (one batch image per grid step)
# ---------------------------------------------------------------------------
def _stage1_kernel(x_ref, w1_ref, b1_ref, w2_ref, b2_ref, m_ref,
                   y1_ref, st_ref, *, pad_h):
    x = x_ref[0]                                                   # (C, L)
    t = jnp.maximum(_conv_h_flat(x, w1_ref[...], b1_ref[...], pad_h), 0.0)
    y1 = _conv_w_flat(t, w2_ref[...], b2_ref[...], 1,
                      m_ref[0:1, :], m_ref[1:2, :])
    y1_ref[0] = y1
    st_ref[0] = _partial_stats(y1)


def _stage2_kernel(y1_ref, sc1_ref, sh1_ref, w3_ref, b3_ref, w4_ref, b4_ref,
                   m_ref, y2_ref, st_ref, *, pad_h, dil):
    z = jnp.maximum(y1_ref[0] * sc1_ref[...] + sh1_ref[...], 0.0)  # BN1 + ReLU
    u = jnp.maximum(_conv_h_flat(z, w3_ref[...], b3_ref[...], pad_h), 0.0)
    y2 = _conv_w_flat(u, w4_ref[...], b4_ref[...], dil,
                      m_ref[0:1, :], m_ref[1:2, :])
    y2_ref[0] = y2
    st_ref[0] = _partial_stats(y2)


def _stage3_kernel(y2_ref, x_ref, sc2_ref, sh2_ref, o_ref):
    y = y2_ref[0] * sc2_ref[...] + sh2_ref[...] + x_ref[0]         # BN2 + skip
    o_ref[0] = jnp.maximum(y, 0.0)


# ---------------------------------------------------------------------------
# Wrapper
# ---------------------------------------------------------------------------
def non_bottleneck_1d_forward(x_nchw, params, dilated, dropprob=0.0):
    """Forward pass of ERFNet's non_bottleneck_1d (training-mode BatchNorm)."""
    (w1, b1, w2, b2, g1, be1, w3, b3, w4, b4, g2, be2) = params
    if dropprob != 0.0:
        # TODO(synk): Dropout2d with p > 0 (random per-channel masking) is not
        # implemented; the PyTorch forward skips dropout when p == 0.
        raise NotImplementedError("dropprob != 0 not supported")

    N, C, H, W = x_nchw.shape
    L = H * W
    f32 = jnp.float32
    x = x_nchw.reshape(N, C, L).astype(f32)

    def fold_h(w):  # (C, C, 3, 1) -> (C, 3C), columns ordered [kh*C + ci]
        return jnp.transpose(w[:, :, :, 0], (0, 2, 1)).reshape(C, 3 * C).astype(f32)

    def fold_w(w):  # (C, C, 1, 3) -> (C, 3C), columns ordered [kw*C + ci]
        return jnp.transpose(w[:, :, 0, :], (0, 2, 1)).reshape(C, 3 * C).astype(f32)

    def col_masks(d):  # boundary masks for the flat W-direction taps
        wc = jnp.arange(L, dtype=jnp.int32) % W
        return jnp.stack([(wc >= d).astype(f32), (wc < W - d).astype(f32)], axis=0)

    col = lambda v: v.reshape(C, 1).astype(f32)

    img_spec = pl.BlockSpec((1, C, L), lambda i: (i, 0, 0))
    st_spec = pl.BlockSpec((1, C, 2), lambda i: (i, 0, 0))

    def const_spec(shape):
        n = len(shape)
        return pl.BlockSpec(shape, lambda *_: (0,) * n)

    cparams = pltpu.CompilerParams(
        dimension_semantics=("parallel",),
        vmem_limit_bytes=32 * 1024 * 1024)

    # ---- pass 1: conv3x1_1 + ReLU + conv1x3_1 (+bias); BN1 partial stats ----
    y1, st1 = pl.pallas_call(
        functools.partial(_stage1_kernel, pad_h=W),
        grid=(N,),
        in_specs=[img_spec,
                  const_spec((C, 3 * C)), const_spec((C, 1)),
                  const_spec((C, 3 * C)), const_spec((C, 1)),
                  const_spec((2, L))],
        out_specs=[img_spec, st_spec],
        out_shape=[jax.ShapeDtypeStruct((N, C, L), f32),
                   jax.ShapeDtypeStruct((N, C, 2), f32)],
        compiler_params=cparams,
    )(x, fold_h(w1), col(b1), fold_w(w2), col(b2), col_masks(1))

    def bn_scale_shift(st, gamma, beta):
        cnt = float(N * L)
        s = jnp.sum(st[:, :, 0], axis=0)
        ss = jnp.sum(st[:, :, 1], axis=0)
        mean = s / cnt
        var = ss / cnt - mean * mean              # biased variance (training BN)
        scale = gamma.astype(f32) * lax.rsqrt(var + BN_EPS)
        shift = beta.astype(f32) - mean * scale
        return scale.reshape(C, 1), shift.reshape(C, 1)

    sc1, sh1 = bn_scale_shift(st1, g1, be1)

    # ---- pass 2: BN1+ReLU + conv3x1_2 + ReLU + conv1x3_2; BN2 partial stats -
    y2, st2 = pl.pallas_call(
        functools.partial(_stage2_kernel, pad_h=dilated * W, dil=dilated),
        grid=(N,),
        in_specs=[img_spec,
                  const_spec((C, 1)), const_spec((C, 1)),
                  const_spec((C, 3 * C)), const_spec((C, 1)),
                  const_spec((C, 3 * C)), const_spec((C, 1)),
                  const_spec((2, L))],
        out_specs=[img_spec, st_spec],
        out_shape=[jax.ShapeDtypeStruct((N, C, L), f32),
                   jax.ShapeDtypeStruct((N, C, 2), f32)],
        compiler_params=cparams,
    )(y1, sc1, sh1, fold_h(w3), col(b3), fold_w(w4), col(b4), col_masks(dilated))

    sc2, sh2 = bn_scale_shift(st2, g2, be2)

    # ---- pass 3: BN2 + residual + ReLU (mem-bound elementwise) --------------
    out = pl.pallas_call(
        _stage3_kernel,
        grid=(N,),
        in_specs=[img_spec, img_spec, const_spec((C, 1)), const_spec((C, 1))],
        out_specs=img_spec,
        out_shape=jax.ShapeDtypeStruct((N, C, L), f32),
        compiler_params=cparams,
    )(y2, x, sc2, sh2)

    return out.reshape(N, C, H, W)


# ---------------------------------------------------------------------------
# Pure-JAX reference of the PyTorch forward (training-mode BN)
# ---------------------------------------------------------------------------
def reference(x_nchw, params, dilated):
    (w1, b1, w2, b2, g1, be1, w3, b3, w4, b4, g2, be2) = params
    f32 = jnp.float32
    x = x_nchw.astype(f32)

    def conv(t, w, b, pad, dil):
        y = lax.conv_general_dilated(
            t, w.astype(f32), window_strides=(1, 1), padding=pad,
            rhs_dilation=dil, dimension_numbers=("NCHW", "OIHW", "NCHW"))
        return y + b.reshape(1, -1, 1, 1).astype(f32)

    def bn(y, g, be):
        mean = jnp.mean(y, axis=(0, 2, 3), keepdims=True)
        var = jnp.mean((y - mean) ** 2, axis=(0, 2, 3), keepdims=True)
        yhat = (y - mean) * lax.rsqrt(var + BN_EPS)
        return yhat * g.reshape(1, -1, 1, 1) + be.reshape(1, -1, 1, 1)

    d = dilated
    t = jax.nn.relu(conv(x, w1, b1, ((1, 1), (0, 0)), (1, 1)))
    t = jax.nn.relu(bn(conv(t, w2, b2, ((0, 0), (1, 1)), (1, 1)), g1, be1))
    t = jax.nn.relu(conv(t, w3, b3, ((d, d), (0, 0)), (d, 1)))
    t = bn(conv(t, w4, b4, ((0, 0), (d, d)), (1, d)), g2, be2)
    return jax.nn.relu(t + x)


if __name__ == "__main__":
    key = jax.random.PRNGKey(0)
    ks = jax.random.split(key, 13)
    N, C, H, W = 2, 4, 16, 16
    dilated = 2

    x = jax.random.normal(ks[0], (N, C, H, W), jnp.float32)
    w1 = 0.1 * jax.random.normal(ks[1], (C, C, 3, 1), jnp.float32)   # conv3x1_1.weight
    b1 = 0.1 * jax.random.normal(ks[2], (C,), jnp.float32)
    w2 = 0.1 * jax.random.normal(ks[3], (C, C, 1, 3), jnp.float32)   # conv1x3_1.weight
    b2 = 0.1 * jax.random.normal(ks[4], (C,), jnp.float32)
    g1 = 1.0 + 0.1 * jax.random.normal(ks[5], (C,), jnp.float32)     # bn1.weight
    be1 = 0.1 * jax.random.normal(ks[6], (C,), jnp.float32)          # bn1.bias
    w3 = 0.1 * jax.random.normal(ks[7], (C, C, 3, 1), jnp.float32)   # conv3x1_2.weight
    b3 = 0.1 * jax.random.normal(ks[8], (C,), jnp.float32)
    w4 = 0.1 * jax.random.normal(ks[9], (C, C, 1, 3), jnp.float32)   # conv1x3_2.weight
    b4 = 0.1 * jax.random.normal(ks[10], (C,), jnp.float32)
    g2 = 1.0 + 0.1 * jax.random.normal(ks[11], (C,), jnp.float32)    # bn2.weight
    be2 = 0.1 * jax.random.normal(ks[12], (C,), jnp.float32)         # bn2.bias

    params = (w1, b1, w2, b2, g1, be1, w3, b3, w4, b4, g2, be2)

    out = jax.block_until_ready(
        non_bottleneck_1d_forward(x, params, dilated, dropprob=0.0))
    ref = jax.block_until_ready(reference(x, params, dilated))
    np.testing.assert_allclose(np.asarray(out), np.asarray(ref),
                               rtol=2e-4, atol=2e-4)
    print("KERNEL_OK")
</pallas_src>

<mosaic_0001>
module attributes {stable_mosaic.version = 11 : i64} {
  func.func @_stage1_kernel(%arg0: i32, %arg1: memref<1x4x256xf32, #tpu.memory_space<vmem>>, %arg2: memref<4x12xf32, #tpu.memory_space<vmem>>, %arg3: memref<4x1xf32, #tpu.memory_space<vmem>>, %arg4: memref<4x12xf32, #tpu.memory_space<vmem>>, %arg5: memref<4x1xf32, #tpu.memory_space<vmem>>, %arg6: memref<2x256xf32, #tpu.memory_space<vmem>>, %arg7: memref<1x4x256xf32, #tpu.memory_space<vmem>>, %arg8: memref<1x4x2xf32, #tpu.memory_space<vmem>>) attributes {dimension_semantics = [#tpu.dimension_semantics<parallel>], iteration_bounds = array<i64: 2>, scalar_prefetch = 0 : i64, scratch_operands = 0 : i64, tpu.core_type = #tpu.core_type<tc>, window_params = [{transform_indices = @transform_0, window_bounds = array<i64: 1, 4, 256>}, {pipeline_mode = #tpu.pipeline_mode<synchronous>, transform_indices = @transform_1, window_bounds = array<i64: 4, 12>}, {pipeline_mode = #tpu.pipeline_mode<synchronous>, transform_indices = @transform_2, window_bounds = array<i64: 4, 1>}, {pipeline_mode = #tpu.pipeline_mode<synchronous>, transform_indices = @transform_3, window_bounds = array<i64: 4, 12>}, {pipeline_mode = #tpu.pipeline_mode<synchronous>, transform_indices = @transform_4, window_bounds = array<i64: 4, 1>}, {pipeline_mode = #tpu.pipeline_mode<synchronous>, transform_indices = @transform_5, window_bounds = array<i64: 2, 256>}, {transform_indices = @transform_6, window_bounds = array<i64: 1, 4, 256>}, {transform_indices = @transform_7, window_bounds = array<i64: 1, 4, 2>}]} {
    %c0 = arith.constant 0 : index
    %c0_0 = arith.constant 0 : index
    %c0_1 = arith.constant 0 : index
    %0 = vector.load %arg1[%c0, %c0_0, %c0_1] : memref<1x4x256xf32, #tpu.memory_space<vmem>>, vector<1x4x256xf32>
    %1 = vector.shape_cast %0 : vector<1x4x256xf32> to vector<4x256xf32>
    %c0_2 = arith.constant 0 : index
    %c0_3 = arith.constant 0 : index
    %2 = vector.load %arg2[%c0_2, %c0_3] : memref<4x12xf32, #tpu.memory_space<vmem>>, vector<4x12xf32>
    %c0_4 = arith.constant 0 : index
    %c0_5 = arith.constant 0 : index
    %3 = vector.load %arg3[%c0_4, %c0_5] : memref<4x1xf32, #tpu.memory_space<vmem>>, vector<4x1xf32>
    %cst = arith.constant 0.000000e+00 : f32
    %4 = vector.broadcast %cst : f32 to vector<4x16xf32>
    %5 = tpu.concatenate %4, %1, %4 in 1 : vector<4x16xf32>, vector<4x256xf32>, vector<4x16xf32> -> vector<4x288xf32>
    %6 = vector.extract_strided_slice %5 {offsets = [0, 0], sizes = [4, 256], strides = [1, 1]} : vector<4x288xf32> to vector<4x256xf32>
    %7 = vector.extract_strided_slice %5 {offsets = [0, 16], sizes = [4, 256], strides = [1, 1]} : vector<4x288xf32> to vector<4x256xf32>
    %8 = vector.extract_strided_slice %5 {offsets = [0, 32], sizes = [4, 256], strides = [1, 1]} : vector<4x288xf32> to vector<4x256xf32>
    %9 = tpu.concatenate %6, %7, %8 in 0 : vector<4x256xf32>, vector<4x256xf32>, vector<4x256xf32> -> vector<12x256xf32>
    %cst_6 = arith.constant dense<0.000000e+00> : vector<4x256xf32>
    %10 = tpu.matmul %2, %9, %cst_6 {dimension_numbers = #tpu.dot_dimension_numbers<[1], [0], [0], [1], [0, 0, 1, 1], [], []>} : vector<4x12xf32>, vector<12x256xf32>, vector<4x256xf32> -> vector<4x256xf32>
    %11 = vector.broadcast %3 : vector<4x1xf32> to vector<4x256xf32>
    %12 = arith.addf %10, %11 : vector<4x256xf32>
    %cst_7 = arith.constant 0.000000e+00 : f32
    %13 = vector.broadcast %cst_7 : f32 to vector<4x256xf32>
    %14 = arith.maximumf %12, %13 : vector<4x256xf32>
    %c0_8 = arith.constant 0 : index
    %c0_9 = arith.constant 0 : index
    %15 = vector.load %arg4[%c0_8, %c0_9] : memref<4x12xf32, #tpu.memory_space<vmem>>, vector<4x12xf32>
    %c0_10 = arith.constant 0 : index
    %c0_11 = arith.constant 0 : index
    %16 = vector.load %arg5[%c0_10, %c0_11] : memref<4x1xf32, #tpu.memory_space<vmem>>, vector<4x1xf32>
    %c0_12 = arith.constant 0 : index
    %c0_13 = arith.constant 0 : index
    %17 = vector.load %arg6[%c0_12, %c0_13] : memref<2x256xf32, #tpu.memory_space<vmem>>, vector<1x256xf32>
    %c1 = arith.constant 1 : index
    %c0_14 = arith.constant 0 : index
    %18 = vector.load %arg6[%c1, %c0_14] : memref<2x256xf32, #tpu.memory_space<vmem>>, vector<1x256xf32>
    %cst_15 = arith.constant 0.000000e+00 : f32
    %19 = vector.broadcast %cst_15 : f32 to vector<4x1xf32>
    %20 = tpu.concatenate %19, %14, %19 in 1 : vector<4x1xf32>, vector<4x256xf32>, vector<4x1xf32> -> vector<4x258xf32>
    %21 = vector.extract_strided_slice %20 {offsets = [0, 0], sizes = [4, 256], strides = [1, 1]} : vector<4x258xf32> to vector<4x256xf32>
    %22 = vector.broadcast %17 : vector<1x256xf32> to vector<4x256xf32>
    %23 = arith.mulf %21, %22 : vector<4x256xf32>
    %24 = vector.extract_strided_slice %20 {offsets = [0, 2], sizes = [4, 256], strides = [1, 1]} : vector<4x258xf32> to vector<4x256xf32>
    %25 = vector.broadcast %18 : vector<1x256xf32> to vector<4x256xf32>
    %26 = arith.mulf %24, %25 : vector<4x256xf32>
    %27 = tpu.concatenate %23, %14, %26 in 0 : vector<4x256xf32>, vector<4x256xf32>, vector<4x256xf32> -> vector<12x256xf32>
    %cst_16 = arith.constant dense<0.000000e+00> : vector<4x256xf32>
    %28 = tpu.matmul %15, %27, %cst_16 {dimension_numbers = #tpu.dot_dimension_numbers<[1], [0], [0], [1], [0, 0, 1, 1], [], []>} : vector<4x12xf32>, vector<12x256xf32>, vector<4x256xf32> -> vector<4x256xf32>
    %29 = vector.broadcast %16 : vector<4x1xf32> to vector<4x256xf32>
    %30 = arith.addf %28, %29 : vector<4x256xf32>
    %c0_17 = arith.constant 0 : index
    %c0_18 = arith.constant 0 : index
    %c0_19 = arith.constant 0 : index
    %31 = vector.load %arg7[%c0_17, %c0_18, %c0_19] : memref<1x4x256xf32, #tpu.memory_space<vmem>>, vector<1x4x256xf32>
    %32 = vector.shape_cast %31 : vector<1x4x256xf32> to vector<4x256xf32>
    %33 = vector.shape_cast %30 : vector<4x256xf32> to vector<1x4x256xf32>
    tpu.vector_store %arg7[%c0_17, %c0_18, %c0_19], %33 {strides = array<i32>} : memref<1x4x256xf32, #tpu.memory_space<vmem>>, vector<1x4x256xf32>,
    %cst_20 = arith.constant dense<0.000000e+00> : vector<4xf32>
    %34 = vector.multi_reduction <add>, %30, %cst_20 [1] : vector<4x256xf32> to vector<4xf32>
    %35 = vector.shape_cast %34 : vector<4xf32> to vector<4x1xf32>
    %36 = arith.mulf %30, %30 : vector<4x256xf32>
    %cst_21 = arith.constant dense<0.000000e+00> : vector<4xf32>
    %37 = vector.multi_reduction <add>, %36, %cst_21 [1] : vector<4x256xf32> to vector<4xf32>
    %38 = vector.shape_cast %37 : vector<4xf32> to vector<4x1xf32>
    %39 = tpu.concatenate %35, %38 in 1 : vector<4x1xf32>, vector<4x1xf32> -> vector<4x2xf32>
    %c0_22 = arith.constant 0 : index
    %c0_23 = arith.constant 0 : index
    %c0_24 = arith.constant 0 : index
    %40 = vector.load %arg8[%c0_22, %c0_23, %c0_24] : memref<1x4x2xf32, #tpu.memory_space<vmem>>, vector<1x4x2xf32>
    %41 = vector.shape_cast %40 : vector<1x4x2xf32> to vector<4x2xf32>
    %42 = vector.shape_cast %39 : vector<4x2xf32> to vector<1x4x2xf32>
    tpu.vector_store %arg8[%c0_22, %c0_23, %c0_24], %42 {strides = array<i32>} : memref<1x4x2xf32, #tpu.memory_space<vmem>>, vector<1x4x2xf32>,
    return
  }
  func.func @transform_0(%arg0: i32) -> (i32, i32, i32) {
    %c0_i32 = arith.constant 0 : i32
    %c0_i32_0 = arith.constant 0 : i32
    %c0_i32_1 = arith.constant 0 : i32
    return %arg0, %c0_i32, %c0_i32_0 : i32, i32, i32
  }
  func.func @transform_1(%arg0: i32) -> (i32, i32) {
    %c0_i32 = arith.constant 0 : i32
    %c0_i32_0 = arith.constant 0 : i32
    %c0_i32_1 = arith.constant 0 : i32
    return %c0_i32, %c0_i32_0 : i32, i32
  }
  func.func @transform_2(%arg0: i32) -> (i32, i32) {
    %c0_i32 = arith.constant 0 : i32
    %c0_i32_0 = arith.constant 0 : i32
    %c0_i32_1 = arith.constant 0 : i32
    return %c0_i32, %c0_i32_0 : i32, i32
  }
  func.func @transform_3(%arg0: i32) -> (i32, i32) {
    %c0_i32 = arith.constant 0 : i32
    %c0_i32_0 = arith.constant 0 : i32
    %c0_i32_1 = arith.constant 0 : i32
    return %c0_i32, %c0_i32_0 : i32, i32
  }
  func.func @transform_4(%arg0: i32) -> (i32, i32) {
    %c0_i32 = arith.constant 0 : i32
    %c0_i32_0 = arith.constant 0 : i32
    %c0_i32_1 = arith.constant 0 : i32
    return %c0_i32, %c0_i32_0 : i32, i32
  }
  func.func @transform_5(%arg0: i32) -> (i32, i32) {
    %c0_i32 = arith.constant 0 : i32
    %c0_i32_0 = arith.constant 0 : i32
    %c0_i32_1 = arith.constant 0 : i32
    return %c0_i32, %c0_i32_0 : i32, i32
  }
  func.func @transform_6(%arg0: i32) -> (i32, i32, i32) {
    %c0_i32 = arith.constant 0 : i32
    %c0_i32_0 = arith.constant 0 : i32
    %c0_i32_1 = arith.constant 0 : i32
    return %arg0, %c0_i32, %c0_i32_0 : i32, i32, i32
  }
  func.func @transform_7(%arg0: i32) -> (i32, i32, i32) {
    %c0_i32 = arith.constant 0 : i32
    %c0_i32_0 = arith.constant 0 : i32
    %c0_i32_1 = arith.constant 0 : i32
    return %arg0, %c0_i32, %c0_i32_0 : i32, i32, i32
  }
}

</mosaic_0001>

<bundles_post_ra>
// kernel: tpu_custom_call.1
= control target key start
LH: loop header
LB: loop body
LE: loop exit
PB: predicated region body
PF: predicated region fallthrough
CT: control target
= control target key end

     0   :  { %13 = vsyncpa [#allocation3], 0  ;;  %s1197_s0 = inlined_call_operand.hbm [shape: f32[2,4,256], index: 0, kind: input, shape index: {}]   ;;  %s1198_s1 = inlined_call_operand.vmem [shape: f32[4,12], index: 1, kind: input, shape index: {}]   ;;  %s1199_s2 = inlined_call_operand.vmem [shape: f32[4,1], index: 2, kind: input, shape index: {}]   ;;  %s1200_s3 = inlined_call_operand.vmem [shape: f32[4,12], index: 3, kind: input, shape index: {}]   ;;  %s1201_s4 = inlined_call_operand.vmem [shape: f32[4,1], index: 4, kind: input, shape index: {}]   ;;  %s1202_s5 = inlined_call_operand.vmem [shape: f32[2,256], index: 5, kind: input, shape index: {}]   ;;  %s1203_s6 = inlined_call_operand.hbm [shape: f32[2,4,256], index: 6, kind: output, shape index: {0}]   ;;  %s1204_s7 = inlined_call_operand.vmem [shape: f32[2,4,2], index: 7, kind: output, shape index: {1}]  }
   0x1   :  { %15 = vsyncpa [#allocation3 + $0x1], 0 }
   0x2   :  { %16 = vsyncpa [#allocation4], 0 }
   0x3   :  { %18 = vsyncpa [#allocation4 + $0x1], 0  ;;  %s988_s24 = smov 0   ;;  %s990_s25 = smov 0  }
   0x4   :  { %s992_s26 = smov 0   ;;  %s994_s27 = smov 0  }
   0x5 LB: > { %s1009_s28 = sadd.s32 4294967295, %s935_s27   ;;  %s725_s29 = sadd.s32 4294967294, %s935_s27   ;;  %s935_s27 = sphi %s994_s27, %s1221_s27   ;;  %s931_s26 = sphi %s992_s26, %s1220_s26   ;;  %s927_s25 = sphi %s990_s25, %s1219_s25   ;;  %s923_s24 = sphi %s988_s24, %s1218_s24  }
   0x6   : > { %s1013_s30 = sadd.s32 1, %s935_s27   ;;  %s31_s8 = sadd.s32 1, %s931_s26 }
   0x7   : > { %s28_s9 = ssub.s32 %s935_s27, %s1013_s30  ;;  %p38_p0 = scmp.ne.s32.totalorder %s931_s26, %s927_s25 }
   0x8   : > { %p29_p1 = scmp.eq.s32.totalorder %s28_s9, 0  ;;  %p39_p2 = scmp.eq.s32.totalorder %s935_s27, 0 }
   0x9   : > { %p44_p3 = scmp.ne.s32.totalorder %s927_s25, %s923_s24  ;;  %p45_p4 = scmp.eq.s32.totalorder %s1009_s28, 0 }
   0xa   : > { %s1025_s10 = scalar_select %p29_p1, %s931_s26, %s31_s8  }
   0xb   : > { %p1027_p5 = por %p39_p2, %p38_p0  ;;  %p1031_p6 = por %p45_p4, %p44_p3 }
   0xc   : > { %p173_p7 = scmp.eq.s32.totalorder %s1009_s28, 1  ;;  %p179_p8 = scmp.eq.s32.totalorder %s725_s29, 1 }
   0xd   : > { %p773_p10 = scmp.lt.s32.totalorder %s935_s27, 2  ;;  %s240_s15 = sand.u32 1, %s931_s26  }
   0xe   : > { %p1038_p11 = por %p173_p7, %p38_p0  ;;  %p1042_p12 = por %p179_p8, %p44_p3 }
   0xf   : > { %s747_s16 = sshll.u32 %s935_s27, 7  ;;  %s728_s17 = sshll.u32 %s240_s15, 3 }
  0x10   : > { %s1208_s13 = scalar_select %p1038_p11, 1, 0 }
  0x11   : > { %s1209_s14 = scalar_select %p1042_p12, 1, 0 }
  0x12   : > { %s1051_s20 = scalar_lea.hbm %s1197_s0, %s747_s16  ;;  %s244_s21 = scalar_lea.vmem [#allocation2], %s728_s17 }
  0x13   : > { %s252_s22 = sshll.u32 %s244_s21, 4  ;;  %p1055_p13 = pnand %p773_p10, %p1027_p5  ;;  %s1059_s22 = int_to_ptr.vmem [resolvable:$true] %s252_s22 }
  0x14   : > { %s241_s29 = scalar_lea.sflag [#allocation3], %s240_s15  ;;  %s839_s8 = scalar_lea.hbm %s1051_s20, 128 }
  0x15   : > { %p840_p2 = scmp.ne.s32.totalorder %s1051_s20, %s839_s8  ;;  %p841_p3 = pneg %p1055_p13 }
  0x16   : > { %s844_s16 = scalar_lea.hbm %s1197_s0, 256  ;;  %p845_p5 = scmp.lt.u32.totalorder %s1051_s20, %s1197_s0 }
  0x17   : > { %p842_p4 = pnand %p841_p3, %p840_p2  ;;  %p846_p8 = scmp.lt.u32.totalorder %s844_s16, %s839_s8 }
  0x18   : > { %p848_p9 = scmp.lt.u32.totalorder %s839_s8, %s1051_s20 }
  0x19   : > { %p843_p7 = pneg %p842_p4  ;;  %p847_p10 = por %p846_p8, %p845_p5 }
  0x1b   : > { %p849_p0 = por %p848_p9, %p847_p10 }
  0x1d   : > { %p850_p1 = pnand %p849_p0, %p843_p7 }
  0x1f   : > { %853 = shalt.err (!%p850_p1)
}
  0x20   : > { %s854_s15 = scalar_lea.vmem %s1059_s22, 128  ;;  %s937_s19 = smov [#allocation2]  }
  0x21   : > { %p855_p2 = scmp.ne.s32.totalorder %s1059_s22, %s854_s15  ;;  %s859_s21 = sshll.u32 %s937_s19, 4  ;;  %s860_s21 = int_to_ptr.vmem [resolvable:$false] %s859_s21 }
  0x22   : > { %s861_s9 = scalar_lea.vmem %s860_s21, 256  ;;  %p862_p11 = scmp.lt.s32.totalorder %s1059_s22, %s860_s21 }
  0x23   : > { %p857_p4 = pnand %p855_p2, %p841_p3  ;;  %p863_p5 = scmp.lt.s32.totalorder %s861_s9, %s854_s15 }
  0x25   : > { %p858_p12 = pneg %p857_p4  ;;  %p864_p8 = por %p863_p5, %p862_p11 }
  0x27   : > { %p865_p9 = pnand %p864_p8, %p858_p12 }
  0x29   : > { %868 = shalt.err (!%p865_p9)
}
  0x2a   : > { %768 = dma.hbm_to_vmem [thread:$0]  (!%p1055_p13), %s1051_s20, 128, %s1059_s22, %s241_s29  }
  0x2b   : > { %p1211_p0 = scmp.lt.s32.totalorder %s935_s27, 3  ;;  %p1212_p1 = scmp.ge.s32.totalorder %s935_s27, 1 }
  0x2d   : > { %p258_p3 = pnand %p1212_p1, %p1211_p0 }
  0x2e   : > { %s1093_s8 = sand.u32 (!%p258_p3), 1, %s927_s25  }
  0x2f   : > { %261 = sbr.rel (%p258_p3) target bundleno = 1137 (0x471), region = 44  ;;  %s732_s11 = sshll.u32 (!%p258_p3), %s1093_s8, 3 }
  0x30   : > { %s264_s16 = scalar_lea.sflag (!%p258_p3), [#allocation3], %s1093_s8  ;;  %s267_s23 = scalar_lea.vmem (!%p258_p3), [#allocation2], %s732_s11 }
  0x36   : > { %914 = dma.done.wait (%p1031_p6), %s264_s16, 128  }
  0x37   : > { %916 = vsyncadd (%p1031_p6), %s264_s16, 4294967168  ;;  %v306_v0 = vld [vmem:[%s267_s23] sm:$0xff]  ;;  %s938_s20 = smov 16   ;;  %vm315_vm0 = vcmask 130048   ;;  %v939_v12 = vmov 0.0   ;;  %s940_s12 = smov 112   ;;  %v455_v35 = vlaneseq }
  0x38   : > { %v310_v1 = vcombine.high %v306_v0, %v306_v0  ;;  %427 = vmatprep.mubr.f32.mxu0 %v939_v12  ;;  %582 = vmatprep.mubr.f32.mxu1 %v939_v12  ;;  %v941_v14 = vmov 0   ;;  %s942_s22 = smov 96   ;;  %v308_v16 = vld [vmem:[%s1199_s2] sm:$0xf]  ;;  %vm333_vm1 = vcmask 916480   ;;  %vm347_vm2 = vcmask 1043456  }
  0x39   : > { %831 = vset.pattern.permute.xlu1 %v941_v14  ;;  %837 = vset.pattern.permute.xlu0 %v941_v14  ;;  %vm344_vm3 = vcmask 785408   ;;  %vm943_vm4 = vmmov 1   ;;  %v307_v34 = vld [vmem:[%s1198_s1] sm:$0xf]  ;;  %vm355_vm6 = vcmask 97280   ;;  %v456_v36 = vshrl.u32 %v455_v35, 7 }
  0x3a   : > { %v816_v2 = vpack.i.bf16 %v310_v1, %v306_v0  ;;  %vm1109_vm5 = vmpackc.low %vm347_vm2, %vm943_vm4  ;;  %v738_v43 = vld [vmem:[%s1202_s5 + $0x1] ss:$2 sm:$0x3]  ;;  %s944_s9 = smov 1   ;;  %s945_s16 = smov 2   ;;  %vm447_vm7 = vcmask 7168  }
  0x3b   : > { %v457_v41 = vsub.s32 0, %v456_v36  ;;  %v461_v44 = vsub.s32 1, %v456_v36  ;;  %v438_v49 = vld [vmem:[%s1202_s5] ss:$2 sm:$0x3]  ;;  %vm480_vm8 = vcmask 15360  }
  0x3c   : > { %817 = vrot.lane.b32.xlu0 %v816_v2, %s938_s20  ;;  %vm501_vm9 = vcmask 1031168   ;;  %s295_s15 = scalar_lea.vmem [#allocation5], %s732_s11  ;;  %s748_s19 = sshll.u32 %s1009_s28, 7 }
  0x3d   : > { %v471_v47 = vrot.slane %v738_v43, %v457_v41  ;;  %v475_v48 = vrot.slane %v738_v43, %v461_v44  ;;  %v458_v50 = vrot.slane %v438_v49, %v457_v41  ;;  %v462_v51 = vrot.slane %v438_v49, %v461_v44  ;;  %s628_s23 = sshll.u32 %s295_s15, 4  ;;  %s610_s20 = scalar_lea.sflag [#allocation4], %s1093_s8  ;;  %s629_s23 = int_to_ptr.vmem [resolvable:$true] %s628_s23 }
  0x3e   : > { %p1215_p11 = scmp.ne.s32.totalorder %s1208_s13, 0 }
  0xae   : > { %v818_v3 = vpop.permute.xlu0 %817 }
  0xaf   : > { %v820_v4 = vunpack.i.h.bf16 %v818_v3  ;;  %v819_v5 = vunpack.i.l.bf16 %v818_v3 }
  0xb1   : > { %v321_v6 = vsel %vm315_vm0, %v820_v4, 0.0  ;;  %v316_v7 = vsel %vm315_vm0, %v819_v5, %v820_v4  ;;  %v320_v8 = vsel %vm315_vm0, 0.0, %v819_v5 }
  0xb2   : > { %v326_v9 = vrot.slane %v321_v6, 4  ;;  %v324_v10 = vrot.slane %v320_v8, 4  ;;  %v325_v11 = vrot.slane %v316_v7, 4  ;;  %v821_v15 = vpack.i.bf16 %v321_v6, %v316_v7  ;;  %v437_v6 = vld [vmem:[%s1201_s4] sm:$0xf] }
  0xb4   : > { %327 = vrot.lane.b32.xlu1 %v324_v10, %s940_s12  ;;  %v826_v13 = vpack.i.bf16 %v326_v9, %v325_v11 }
  0xb6   : > { %827 = vrot.lane.b32.xlu0 %v826_v13, %s940_s12  ;;  %s946_s12 = smov 126  }
  0xb8   : > { %822 = vrot.lane.b32.xlu1 %v821_v15, %s942_s22  ;;  %v436_v15 = vld [vmem:[%s1200_s3] sm:$0xf] }
  0xba   : > { %338 = vrot.lane.b32.xlu0 %v320_v8, %s942_s22  ;;  %s947_s22 = smov [#allocation5]  }
  0xbb   : > { %s873_s11 = sshll.u32 %s947_s22, 4  ;;  %s874_s11 = int_to_ptr.vmem [resolvable:$false] %s873_s11 }
  0xbc   : > { %352 = vperm.xlu1 %831, %v308_v16   ;;  %s875_s29 = scalar_lea.vmem %s874_s11, 256  ;;  %p876_p7 = scmp.lt.s32.totalorder %s629_s23, %s874_s11 }
 0x126   : > { %v328_v17 = vpop.permute.xlu1 %327 }
 0x128   : > { %v828_v18 = vpop.permute.xlu0 %827 }
 0x129   : > { %v830_v19 = vunpack.i.h.bf16 %v828_v18  ;;  %v829_v20 = vunpack.i.l.bf16 %v828_v18 }
 0x12a   : > { %v823_v21 = vpop.permute.xlu1 %822 }
 0x12b   : > { %v825_v22 = vunpack.i.h.bf16 %v823_v21  ;;  %v824_v23 = vunpack.i.l.bf16 %v823_v21  ;;  %v334_v24 = vsel %vm333_vm1, %v328_v17, %v829_v20  ;;  %v335_v25 = vsel %vm333_vm1, %v829_v20, %v830_v19 }
 0x12c   : > { %v339_v26 = vpop.permute.xlu0 %338  ;;  %v348_v27 = vsel %vm347_vm2, %v320_v8, %v334_v24  ;;  %v349_v28 = vsel %vm347_vm2, %v316_v7, %v335_v25 }
 0x12d   : > { %v345_v29 = vsel %vm344_vm3, %v339_v26, %v824_v23  ;;  %v346_v30 = vsel %vm344_vm3, %v824_v23, %v825_v22 }
 0x12e   : > { %v752_v32 = vpack.c.bf16 %v345_v29, %v348_v27  ;;  %v749_v33 = vpack.c.bf16 %v346_v30, %v349_v28 }
 0x130   : > { %751 = vmatprep.subr.msk.bf16.mxu0 %vm1109_vm5, %v749_v33 }
 0x131   : > { %754 = vmatpush1.bf16.msk.msra.mxu0 %vm1109_vm5, %v752_v32 }
 0x134   : > { %737 = vmatmul.mubr.msk.f32.vlgmr.msra.gmra.mrb[0].mxu0 %vm355_vm6, %v307_v34 }
 0x13b   : > { %v353_v37 = vpop.permute.xlu1 %352 }
 0x207   : > { %v429_v38 = vpop.f32.mrb[0].mxu0 }
 0x208   : > { %v430_v39 = vadd.f32 %v429_v38, %v353_v37  ;;  %v431_v40 = vpop.f32.mrb[1].mxu0 }
 0x209   : > { %v432_v42 = vadd.f32 %v431_v40, %v353_v37 }
 0x20a   : > { %v434_v45 = vmax.f32 %v430_v39, 0.0 }
 0x20b   : > { %v435_v46 = vmax.f32 %v432_v42, 0.0 }
 0x20c   : > { %443 = vrot.lane.b32.xlu0 %v434_v45, %s944_s9  ;;  %v488_v55 = vrot.slane %v434_v45, 4 }
 0x20d   : > { %445 = vrot.lane.b32.xlu1 %v435_v46, %s944_s9  ;;  %v489_v58 = vrot.slane %v435_v46, 4 }
 0x210   : > { %476 = vrot.lane.b32.xlu0 %v471_v47, %s945_s16 }
 0x211   : > { %478 = vrot.lane.b32.xlu1 %v475_v48, %s945_s16  ;;  %s1153_s16 = scalar_lea.hbm %s1203_s6, %s748_s19 }
 0x27e   : > { %v444_v52 = vpop.permute.xlu0 %443 }
 0x27f   : > { %v452_v53 = vsel %vm447_vm7, 0.0, %v444_v52  ;;  %v446_v54 = vpop.permute.xlu1 %445 }
 0x280   : > { %v465_v56 = vmul.f32 %v458_v50, %v452_v53  ;;  %v448_v57 = vsel %vm447_vm7, %v444_v52, %v446_v54  ;;  %v453_v62 = vsel %vm447_vm7, %v446_v54, 0.0 }
 0x281   : > { %v466_v59 = vmul.f32 %v462_v51, %v448_v57 }
 0x282   : > { %v477_v60 = vpop.permute.xlu0 %476  ;;  %v504_v61 = vsel %vm347_vm2, %v465_v56, %v488_v55 }
 0x283   : > { %v485_v63 = vmul.f32 %v477_v60, %v452_v53  ;;  %v479_v0 = vpop.permute.xlu1 %478  ;;  %v505_v1 = vsel %vm347_vm2, %v466_v59, %v489_v58 }
 0x284   : > { %v481_v2 = vsel %vm480_vm8, %v477_v60, %v479_v0  ;;  %v487_v3 = vmul.f32 %v479_v0, %v453_v62 }
 0x285   : > { %v486_v4 = vmul.f32 %v481_v2, %v448_v57  ;;  %495 = vrot.lane.b32.xlu1 %v485_v63, %s946_s12 }
 0x287   : > { %v832_v5 = vpack.i.bf16 %v487_v3, %v486_v4 }
 0x289   : > { %833 = vrot.lane.b32.xlu0 %v832_v5, %s946_s12  ;;  %s869_s12 = scalar_lea.vmem %s629_s23, 128 }
 0x28a   : > { %p870_p6 = scmp.ne.s32.totalorder %s629_s23, %s869_s12  ;;  %p877_p10 = scmp.lt.s32.totalorder %s875_s29, %s869_s12 }
 0x28c   : > { %p871_p12 = pnand %p870_p6, %p1215_p11  ;;  %p878_p2 = por %p877_p10, %p876_p7 }
 0x28d   : > { %508 = vperm.xlu0 %837, %v437_v6  }
 0x28e   : > { %p872_p13 = pneg %p871_p12 }
 0x290   : > { %p879_p4 = pnand %p878_p2, %p872_p13 }
 0x2f7   : > { %v496_v10 = vpop.permute.xlu1 %495 }
 0x2fb   : > { %v834_v7 = vpop.permute.xlu0 %833 }
 0x2fc   : > { %v836_v8 = vunpack.i.h.bf16 %v834_v7  ;;  %v835_v9 = vunpack.i.l.bf16 %v834_v7 }
 0x2fe   : > { %v503_v11 = vsel %vm501_vm9, %v835_v9, %v836_v8  ;;  %v502_v12 = vsel %vm501_vm9, %v496_v10, %v835_v9 }
 0x2ff   : > { %v755_v13 = vpack.c.bf16 %v503_v11, %v505_v1  ;;  %v758_v14 = vpack.c.bf16 %v502_v12, %v504_v61 }
 0x301   : > { %757 = vmatprep.subr.msk.bf16.mxu1 %vm1109_vm5, %v755_v13 }
 0x302   : > { %760 = vmatpush1.bf16.msk.msra.mxu1 %vm1109_vm5, %v758_v14 }
 0x305   : > { %741 = vmatmul.mubr.msk.f32.vlgmr.msra.gmra.mrb[0].mxu1 %vm355_vm6, %v436_v15 }
 0x30c   : > { %v509_v16 = vpop.permute.xlu0 %508 }
 0x3d8   : > { %v584_v17 = vpop.f32.mrb[0].mxu1 }
 0x3d9   : > { %v585_v18 = vadd.f32 %v584_v17, %v509_v16  ;;  %v586_v19 = vpop.f32.mrb[1].mxu1 }
 0x3da   : > { %v587_v20 = vadd.f32 %v586_v19, %v509_v16 }
 0x3db   : > { %v594_v21 = vsel %vm347_vm2, %v585_v18, 0.0  ;;  %v599_v22 = vmul.f32 %v585_v18, %v585_v18 }
 0x3dc   : > { %v591_v23 = vcombine.low %v585_v18, %v587_v20  ;;  %v595_v24 = vsel %vm347_vm2, %v587_v20, 0.0  ;;  %v600_v25 = vmul.f32 %v587_v20, %v587_v20 }
 0x3dd   : > { %v596_v26 = vadd.f32 %v595_v24, %v594_v21  ;;  %v601_v27 = vsel %vm347_vm2, %v599_v22, 0.0 }
 0x3de   : > { %v602_v28 = vsel %vm347_vm2, %v600_v25, 0.0  ;;  %593 = vst [vmem:[%s295_s15] sm:$0xff] %v591_v23 }
 0x3df   : > { %597 = vadd.xlane.f32.xlu1 %v596_v26  ;;  %v603_v29 = vadd.f32 %v602_v28, %v601_v27 }
 0x3e1   : > { %604 = vadd.xlane.f32.xlu0 %v603_v29 }
 0x3e2   : > { %882 = shalt.err (!%p879_p4)
}
 0x3e3   : > { %s883_s8 = scalar_lea.hbm %s1153_s16, 128  ;;  %s887_s15 = scalar_lea.hbm %s1203_s6, 256 }
 0x3e4   : > { %p884_p5 = scmp.ne.s32.totalorder %s1153_s16, %s883_s8  ;;  %p888_p0 = scmp.lt.u32.totalorder %s1153_s16, %s1203_s6 }
 0x3e5   : > { %p889_p1 = scmp.lt.u32.totalorder %s887_s15, %s883_s8  ;;  %p891_p6 = scmp.lt.u32.totalorder %s883_s8, %s1153_s16 }
 0x3e6   : > { %p885_p8 = pnand %p884_p5, %p1215_p11 }
 0x3e7   : > { %p890_p3 = por %p889_p1, %p888_p0 }
 0x3e8   : > { %p886_p9 = pneg %p885_p8 }
 0x3e9   : > { %p892_p12 = por %p891_p6, %p890_p3 }
 0x3eb   : > { %p893_p13 = pnand %p892_p12, %p886_p9 }
 0x3ed   : > { %896 = shalt.err (!%p893_p13)
}
 0x3ee   : > { %763 = dma.vmem_to_hbm [thread:$0]  (%p1215_p11), %s629_s23, 128, %s1153_s16, %s610_s20   ;;  %vm607_vm10 = vcmask 11264  }
 0x3ef   : > { %p302_p7 = scmp.lt.s32.totalorder %s1009_s28, 1 }
 0x3f1   : > { %s1223_s28 = smov (!%p302_p7, %s1009_s28), 1 }
 0x3f2   : > { %s734_s9 = sshll.u32 %s1223_s28, 2 }
 0x3f3   : > { %s305_s11 = scalar_lea.vmem %s1204_s7, %s734_s9 }
 0x46c   : > { %v598_v30 = vpop.xlane.xlu1 %597 }
 0x46e   : > { %v605_v31 = vpop.xlane.xlu0 %604 }
 0x46f   : > { %v606_v32 = vsel %vm447_vm7, %v598_v30, %v605_v31 }
 0x470   : > { %608 = vst.msk [vmem:[%s305_s11] sm:$0xf] %vm607_vm10, %v606_v32 }
 0x471 PF: > { %s643_s13 = sand.u32 1, %s923_s24   ;;  %p1216_p10 = scmp.ne.s32.totalorder %s1209_s14, 0 }
 0x472   : > { %p1217_p11 = scmp.ge.s32.totalorder %s935_s27, 2  ;;  %s644_s16 = scalar_lea.sflag [#allocation4], %s643_s13 }
 0x474   : > { %p770_p2 = pnand %p1217_p11, %p1216_p10 }
 0x476   : > { %918 = dma.done.wait (!%p770_p2), %s644_s16, 128  }
 0x477   : > { %920 = vsyncadd (!%p770_p2), %s644_s16, 4294967168  ;;  %p21_p4 = scmp.ge.s32.totalorder %s1013_s30, 4   ;;  %s1218_s24 = smov %s927_s25 }
 0x478   : > { %s1219_s25 = smov %s931_s26  ;;  %s1220_s26 = smov %s1025_s10 }
 0x479   : > { %s1221_s27 = smov %s1013_s30  ;;  %23 = sbr.rel (!%p21_p4) target bundleno = 5 (0x5), region = 102 }
 0x480   :  { %656 = vsyncpa [#allocation3], 1 }
 0x481   :  { %658 = vsyncpa [#allocation3 + $0x1], 1 }
 0x482   :  { %659 = vsyncpa [#allocation4], 1 }
 0x483   :  { %661 = vsyncpa [#allocation4 + $0x1], 1 }

</bundles_post_ra>
